<compile_context>
chip_gen: v7x
topology: tpu7x:2x2x1
jax: 0.10.0
libtpu: 0.0.40
codegen_flags: <defaults>
</compile_context>

<pallas_src>
import numpy as np
import jax
import jax.numpy as jnp
from jax.experimental import pallas as pl
from jax.experimental.pallas import tpu as pltpu


def _bridge_kernel(x_ref,      # VMEM (1, D)    shared input row
                   a_ref,      # VMEM (R, D, D) a_ref[r] = (wout[r] @ win[r]).T
                   by_ref,     # VMEM (R, D)    by_ref[r] = wout[r] @ bin[r]
                   s_ref,      # VMEM (B, R)    per-timestep resonator gains
                   tail_ref,   # VMEM (1, D)    0.4*c_mean@bout + 0.6*feedback
                   out_ref,    # VMEM (B, D)    batched output
                   y_scr):     # VMEM (R, D)    scratch: Y[r] = A[r] x + by[r]
    num_res = a_ref.shape[0]
    x = x_ref[...]                                            # (1, D)

    # Timestep-independent part: Y[r] = A[r] x + by[r], one row per resonator.
    # Static Python loop -> fully unrolled; 16 tiny MXU matmuls (noise-level
    # cost, keeps everything as plain 2-D ops with no reshapes/relayouts).
    for r in range(num_res):
        y_scr[r:r + 1, :] = (
            jnp.dot(x, a_ref[r], preferred_element_type=jnp.float32)
            + by_ref[r:r + 1, :])

    # Timestep-dependent part: out[b] = sum_r s[b, r] * Y[r] + tail.
    out_ref[...] = (
        jnp.dot(s_ref[...], y_scr[...], preferred_element_type=jnp.float32)
        + tail_ref[...])


def pack_params(params):
    """One-time packing / pre-fusion of weights (hoisted out of forward)."""
    win, wout = params["win"], params["wout"]                 # (R, D, D)
    _, dim, _ = win.shape

    # Pre-fuse the two per-resonator linears (exact f32 algebra).
    A = jnp.einsum("rik,rkj->rij", wout, win)                 # A[r] = wout[r] @ win[r]
    a_t = jnp.transpose(A, (0, 2, 1))                         # a_t[r, j, k] = A[r][k, j]
    by = jnp.einsum("rkj,rj->rk", wout, params["bin"])        # (R, D)

    c_mean = jnp.mean(params["coupling"], axis=0)             # (R,)
    amp_cm = 0.4 * c_mean * params["amplitude"]               # folded constant gain (R,)
    tail = 0.4 * (c_mean @ params["bout"]) + 0.6 * params["audio_feedback"]

    return dict(a_t=a_t.astype(jnp.float32),
                by=by.astype(jnp.float32),
                amp_cm=amp_cm.astype(jnp.float32),
                carrier=params["carrier_freq"].astype(jnp.float32),
                phase=params["phase"].astype(jnp.float32),
                tail=tail.reshape(1, dim).astype(jnp.float32))


@jax.jit
def continuous_wave_bridge_forward_batched(x, t_batch, packed):
    """Forward pass for a shared input x over a batch of timesteps t_batch."""
    dim = x.shape[0]
    batch = t_batch.shape[0]
    num_res = packed["a_t"].shape[0]

    # Per-timestep resonator gain (fused into this jit; no extra dispatches):
    # s[b, r] = 0.4*c_mean[r]*amplitude[r]*sin(2*pi*carrier[r]*t[b] + phase[r])
    s = (packed["amp_cm"][None, :]
         * jnp.sin(2.0 * np.pi * packed["carrier"][None, :]
                   * t_batch.astype(jnp.float32)[:, None]
                   + packed["phase"][None, :])).astype(jnp.float32)

    x2 = x.reshape(1, dim).astype(jnp.float32)

    vmem = pl.BlockSpec(memory_space=pltpu.MemorySpace.VMEM)
    return pl.pallas_call(
        _bridge_kernel,
        out_shape=jax.ShapeDtypeStruct((batch, dim), jnp.float32),
        in_specs=[vmem] * 5,
        out_specs=vmem,
        scratch_shapes=[pltpu.VMEM((num_res, dim), jnp.float32)],
    )(x2, packed["a_t"], packed["by"], s, packed["tail"])


def continuous_wave_bridge_forward(x, t, packed):
    """Single-timestep API matching module.forward(x, t)."""
    out = continuous_wave_bridge_forward_batched(
        x, jnp.asarray([t], dtype=jnp.float32), packed)
    return out[0]


def init_params(key, dim, num_resonators):
    R = num_resonators
    lim = 1.0 / np.sqrt(dim)
    ks = jax.random.split(key, 9)
    p = dict(
        base_freq=jax.random.uniform(ks[0], (R,)) * 10.0 + 5.0,
        carrier_freq=jax.random.uniform(ks[1], (R,)) * 200.0 + 100.0,
        phase=jax.random.uniform(ks[2], (R,)) * 2.0 * np.pi,
        amplitude=jax.random.uniform(ks[3], (R,)) * 0.3 + 0.7,
        win=jax.random.uniform(ks[4], (R, dim, dim), minval=-lim, maxval=lim),
        bin=jax.random.uniform(ks[5], (R, dim), minval=-lim, maxval=lim),
        wout=jax.random.uniform(ks[6], (R, dim, dim), minval=-lim, maxval=lim),
        bout=jax.random.uniform(ks[7], (R, dim), minval=-lim, maxval=lim),
        coupling=jax.random.uniform(ks[8], (R, R)) * 0.2,
        audio_feedback=jnp.zeros((dim,), jnp.float32),
    )
    return {k: v.astype(jnp.float32) for k, v in p.items()}


def reference_forward(x, t, params):
    """Pure-JAX reference of one forward pass (first-call / dt=0 path)."""
    wave = params["amplitude"] * jnp.sin(
        2.0 * np.pi * params["carrier_freq"] * t + params["phase"])
    # oscillation_state = 0 on first call -> the (1 + sin(0)) factor is 1.
    h = jnp.einsum("rij,j->ri", params["win"], x) + params["bin"]
    m = h * wave[:, None]
    r = jnp.einsum("rij,rj->ri", params["wout"], m) + params["bout"]
    coupled = params["coupling"] @ r
    return 0.4 * coupled.mean(axis=0) + 0.6 * params["audio_feedback"]


if __name__ == "__main__":
    DIM = 32
    NUM_RESONATORS = 16
    BATCH_T = 8

    key = jax.random.PRNGKey(0)
    kx, kp = jax.random.split(key)
    x = jax.random.normal(kx, (DIM,), dtype=jnp.float32)
    params = init_params(kp, DIM, NUM_RESONATORS)
    t_batch = jnp.linspace(0.1, 0.8, BATCH_T, dtype=jnp.float32)

    packed = pack_params(params)                       # one-time weight packing

    # Batched (throughput) path: B timesteps in one pallas_call.
    out_b = continuous_wave_bridge_forward_batched(x, t_batch, packed)
    out_b = jax.block_until_ready(out_b)
    assert out_b.shape == (BATCH_T, DIM)

    ref_b = jax.block_until_ready(
        jax.vmap(lambda tt: reference_forward(x, tt, params))(t_batch))
    np.testing.assert_allclose(np.asarray(out_b), np.asarray(ref_b),
                               rtol=1e-4, atol=1e-5)

    # Single-timestep API (module.forward(x, t) parity).
    out_1 = jax.block_until_ready(
        continuous_wave_bridge_forward(x, 0.5, packed))
    ref_1 = jax.block_until_ready(reference_forward(x, 0.5, params))
    assert out_1.shape == (DIM,)
    np.testing.assert_allclose(np.asarray(out_1), np.asarray(ref_1),
                               rtol=1e-4, atol=1e-5)

    print("KERNEL_OK")
</pallas_src>

<mosaic_0001>
module attributes {stable_mosaic.version = 11 : i64} {
  func.func @_bridge_kernel(%arg0: memref<1x32xf32, #tpu.memory_space<vmem>>, %arg1: memref<16x32x32xf32, #tpu.memory_space<vmem>>, %arg2: memref<16x32xf32, #tpu.memory_space<vmem>>, %arg3: memref<8x16xf32, #tpu.memory_space<vmem>>, %arg4: memref<1x32xf32, #tpu.memory_space<vmem>>, %arg5: memref<8x32xf32, #tpu.memory_space<vmem>>, %arg6: memref<16x32xf32, #tpu.memory_space<vmem>>) attributes {dimension_semantics = [], scalar_prefetch = 0 : i64, scratch_operands = 1 : i64, tpu.core_type = #tpu.core_type<tc>} {
    %c0 = arith.constant 0 : index
    %c0_0 = arith.constant 0 : index
    %0 = vector.load %arg0[%c0, %c0_0] : memref<1x32xf32, #tpu.memory_space<vmem>>, vector<1x32xf32>
    %c0_1 = arith.constant 0 : index
    %c0_2 = arith.constant 0 : index
    %c0_3 = arith.constant 0 : index
    %1 = vector.load %arg1[%c0_1, %c0_2, %c0_3] : memref<16x32x32xf32, #tpu.memory_space<vmem>>, vector<1x32x32xf32>
    %2 = vector.shape_cast %1 : vector<1x32x32xf32> to vector<32x32xf32>
    %cst = arith.constant dense<0.000000e+00> : vector<1x32xf32>
    %3 = tpu.matmul %0, %2, %cst {dimension_numbers = #tpu.dot_dimension_numbers<[1], [0], [0], [1], [0, 0, 1, 1], [], []>} : vector<1x32xf32>, vector<32x32xf32>, vector<1x32xf32> -> vector<1x32xf32>
    %c0_4 = arith.constant 0 : index
    %c0_5 = arith.constant 0 : index
    %4 = vector.load %arg2[%c0_4, %c0_5] : memref<16x32xf32, #tpu.memory_space<vmem>>, vector<1x32xf32>
    %5 = arith.addf %3, %4 : vector<1x32xf32>
    %c0_6 = arith.constant 0 : index
    %c0_7 = arith.constant 0 : index
    %6 = vector.load %arg6[%c0_6, %c0_7] : memref<16x32xf32, #tpu.memory_space<vmem>>, vector<1x32xf32>
    tpu.vector_store %arg6[%c0_6, %c0_7], %5 {strides = array<i32>} : memref<16x32xf32, #tpu.memory_space<vmem>>, vector<1x32xf32>,
    %c1 = arith.constant 1 : index
    %c0_8 = arith.constant 0 : index
    %c0_9 = arith.constant 0 : index
    %7 = vector.load %arg1[%c1, %c0_8, %c0_9] : memref<16x32x32xf32, #tpu.memory_space<vmem>>, vector<1x32x32xf32>
    %8 = vector.shape_cast %7 : vector<1x32x32xf32> to vector<32x32xf32>
    %cst_10 = arith.constant dense<0.000000e+00> : vector<1x32xf32>
    %9 = tpu.matmul %0, %8, %cst_10 {dimension_numbers = #tpu.dot_dimension_numbers<[1], [0], [0], [1], [0, 0, 1, 1], [], []>} : vector<1x32xf32>, vector<32x32xf32>, vector<1x32xf32> -> vector<1x32xf32>
    %c1_11 = arith.constant 1 : index
    %c0_12 = arith.constant 0 : index
    %10 = vector.load %arg2[%c1_11, %c0_12] : memref<16x32xf32, #tpu.memory_space<vmem>>, vector<1x32xf32>
    %11 = arith.addf %9, %10 : vector<1x32xf32>
    %c1_13 = arith.constant 1 : index
    %c0_14 = arith.constant 0 : index
    %12 = vector.load %arg6[%c1_13, %c0_14] : memref<16x32xf32, #tpu.memory_space<vmem>>, vector<1x32xf32>
    tpu.vector_store %arg6[%c1_13, %c0_14], %11 {strides = array<i32>} : memref<16x32xf32, #tpu.memory_space<vmem>>, vector<1x32xf32>,
    %c2 = arith.constant 2 : index
    %c0_15 = arith.constant 0 : index
    %c0_16 = arith.constant 0 : index
    %13 = vector.load %arg1[%c2, %c0_15, %c0_16] : memref<16x32x32xf32, #tpu.memory_space<vmem>>, vector<1x32x32xf32>
    %14 = vector.shape_cast %13 : vector<1x32x32xf32> to vector<32x32xf32>
    %cst_17 = arith.constant dense<0.000000e+00> : vector<1x32xf32>
    %15 = tpu.matmul %0, %14, %cst_17 {dimension_numbers = #tpu.dot_dimension_numbers<[1], [0], [0], [1], [0, 0, 1, 1], [], []>} : vector<1x32xf32>, vector<32x32xf32>, vector<1x32xf32> -> vector<1x32xf32>
    %c2_18 = arith.constant 2 : index
    %c0_19 = arith.constant 0 : index
    %16 = vector.load %arg2[%c2_18, %c0_19] : memref<16x32xf32, #tpu.memory_space<vmem>>, vector<1x32xf32>
    %17 = arith.addf %15, %16 : vector<1x32xf32>
    %c2_20 = arith.constant 2 : index
    %c0_21 = arith.constant 0 : index
    %18 = vector.load %arg6[%c2_20, %c0_21] : memref<16x32xf32, #tpu.memory_space<vmem>>, vector<1x32xf32>
    tpu.vector_store %arg6[%c2_20, %c0_21], %17 {strides = array<i32>} : memref<16x32xf32, #tpu.memory_space<vmem>>, vector<1x32xf32>,
    %c3 = arith.constant 3 : index
    %c0_22 = arith.constant 0 : index
    %c0_23 = arith.constant 0 : index
    %19 = vector.load %arg1[%c3, %c0_22, %c0_23] : memref<16x32x32xf32, #tpu.memory_space<vmem>>, vector<1x32x32xf32>
    %20 = vector.shape_cast %19 : vector<1x32x32xf32> to vector<32x32xf32>
    %cst_24 = arith.constant dense<0.000000e+00> : vector<1x32xf32>
    %21 = tpu.matmul %0, %20, %cst_24 {dimension_numbers = #tpu.dot_dimension_numbers<[1], [0], [0], [1], [0, 0, 1, 1], [], []>} : vector<1x32xf32>, vector<32x32xf32>, vector<1x32xf32> -> vector<1x32xf32>
    %c3_25 = arith.constant 3 : index
    %c0_26 = arith.constant 0 : index
    %22 = vector.load %arg2[%c3_25, %c0_26] : memref<16x32xf32, #tpu.memory_space<vmem>>, vector<1x32xf32>
    %23 = arith.addf %21, %22 : vector<1x32xf32>
    %c3_27 = arith.constant 3 : index
    %c0_28 = arith.constant 0 : index
    %24 = vector.load %arg6[%c3_27, %c0_28] : memref<16x32xf32, #tpu.memory_space<vmem>>, vector<1x32xf32>
    tpu.vector_store %arg6[%c3_27, %c0_28], %23 {strides = array<i32>} : memref<16x32xf32, #tpu.memory_space<vmem>>, vector<1x32xf32>,
    %c4 = arith.constant 4 : index
    %c0_29 = arith.constant 0 : index
    %c0_30 = arith.constant 0 : index
    %25 = vector.load %arg1[%c4, %c0_29, %c0_30] : memref<16x32x32xf32, #tpu.memory_space<vmem>>, vector<1x32x32xf32>
    %26 = vector.shape_cast %25 : vector<1x32x32xf32> to vector<32x32xf32>
    %cst_31 = arith.constant dense<0.000000e+00> : vector<1x32xf32>
    %27 = tpu.matmul %0, %26, %cst_31 {dimension_numbers = #tpu.dot_dimension_numbers<[1], [0], [0], [1], [0, 0, 1, 1], [], []>} : vector<1x32xf32>, vector<32x32xf32>, vector<1x32xf32> -> vector<1x32xf32>
    %c4_32 = arith.constant 4 : index
    %c0_33 = arith.constant 0 : index
    %28 = vector.load %arg2[%c4_32, %c0_33] : memref<16x32xf32, #tpu.memory_space<vmem>>, vector<1x32xf32>
    %29 = arith.addf %27, %28 : vector<1x32xf32>
    %c4_34 = arith.constant 4 : index
    %c0_35 = arith.constant 0 : index
    %30 = vector.load %arg6[%c4_34, %c0_35] : memref<16x32xf32, #tpu.memory_space<vmem>>, vector<1x32xf32>
    tpu.vector_store %arg6[%c4_34, %c0_35], %29 {strides = array<i32>} : memref<16x32xf32, #tpu.memory_space<vmem>>, vector<1x32xf32>,
    %c5 = arith.constant 5 : index
    %c0_36 = arith.constant 0 : index
    %c0_37 = arith.constant 0 : index
    %31 = vector.load %arg1[%c5, %c0_36, %c0_37] : memref<16x32x32xf32, #tpu.memory_space<vmem>>, vector<1x32x32xf32>
    %32 = vector.shape_cast %31 : vector<1x32x32xf32> to vector<32x32xf32>
    %cst_38 = arith.constant dense<0.000000e+00> : vector<1x32xf32>
    %33 = tpu.matmul %0, %32, %cst_38 {dimension_numbers = #tpu.dot_dimension_numbers<[1], [0], [0], [1], [0, 0, 1, 1], [], []>} : vector<1x32xf32>, vector<32x32xf32>, vector<1x32xf32> -> vector<1x32xf32>
    %c5_39 = arith.constant 5 : index
    %c0_40 = arith.constant 0 : index
    %34 = vector.load %arg2[%c5_39, %c0_40] : memref<16x32xf32, #tpu.memory_space<vmem>>, vector<1x32xf32>
    %35 = arith.addf %33, %34 : vector<1x32xf32>
    %c5_41 = arith.constant 5 : index
    %c0_42 = arith.constant 0 : index
    %36 = vector.load %arg6[%c5_41, %c0_42] : memref<16x32xf32, #tpu.memory_space<vmem>>, vector<1x32xf32>
    tpu.vector_store %arg6[%c5_41, %c0_42], %35 {strides = array<i32>} : memref<16x32xf32, #tpu.memory_space<vmem>>, vector<1x32xf32>,
    %c6 = arith.constant 6 : index
    %c0_43 = arith.constant 0 : index
    %c0_44 = arith.constant 0 : index
    %37 = vector.load %arg1[%c6, %c0_43, %c0_44] : memref<16x32x32xf32, #tpu.memory_space<vmem>>, vector<1x32x32xf32>
    %38 = vector.shape_cast %37 : vector<1x32x32xf32> to vector<32x32xf32>
    %cst_45 = arith.constant dense<0.000000e+00> : vector<1x32xf32>
    %39 = tpu.matmul %0, %38, %cst_45 {dimension_numbers = #tpu.dot_dimension_numbers<[1], [0], [0], [1], [0, 0, 1, 1], [], []>} : vector<1x32xf32>, vector<32x32xf32>, vector<1x32xf32> -> vector<1x32xf32>
    %c6_46 = arith.constant 6 : index
    %c0_47 = arith.constant 0 : index
    %40 = vector.load %arg2[%c6_46, %c0_47] : memref<16x32xf32, #tpu.memory_space<vmem>>, vector<1x32xf32>
    %41 = arith.addf %39, %40 : vector<1x32xf32>
    %c6_48 = arith.constant 6 : index
    %c0_49 = arith.constant 0 : index
    %42 = vector.load %arg6[%c6_48, %c0_49] : memref<16x32xf32, #tpu.memory_space<vmem>>, vector<1x32xf32>
    tpu.vector_store %arg6[%c6_48, %c0_49], %41 {strides = array<i32>} : memref<16x32xf32, #tpu.memory_space<vmem>>, vector<1x32xf32>,
    %c7 = arith.constant 7 : index
    %c0_50 = arith.constant 0 : index
    %c0_51 = arith.constant 0 : index
    %43 = vector.load %arg1[%c7, %c0_50, %c0_51] : memref<16x32x32xf32, #tpu.memory_space<vmem>>, vector<1x32x32xf32>
    %44 = vector.shape_cast %43 : vector<1x32x32xf32> to vector<32x32xf32>
    %cst_52 = arith.constant dense<0.000000e+00> : vector<1x32xf32>
    %45 = tpu.matmul %0, %44, %cst_52 {dimension_numbers = #tpu.dot_dimension_numbers<[1], [0], [0], [1], [0, 0, 1, 1], [], []>} : vector<1x32xf32>, vector<32x32xf32>, vector<1x32xf32> -> vector<1x32xf32>
    %c7_53 = arith.constant 7 : index
    %c0_54 = arith.constant 0 : index
    %46 = vector.load %arg2[%c7_53, %c0_54] : memref<16x32xf32, #tpu.memory_space<vmem>>, vector<1x32xf32>
    %47 = arith.addf %45, %46 : vector<1x32xf32>
    %c7_55 = arith.constant 7 : index
    %c0_56 = arith.constant 0 : index
    %48 = vector.load %arg6[%c7_55, %c0_56] : memref<16x32xf32, #tpu.memory_space<vmem>>, vector<1x32xf32>
    tpu.vector_store %arg6[%c7_55, %c0_56], %47 {strides = array<i32>} : memref<16x32xf32, #tpu.memory_space<vmem>>, vector<1x32xf32>,
    %c8 = arith.constant 8 : index
    %c0_57 = arith.constant 0 : index
    %c0_58 = arith.constant 0 : index
    %49 = vector.load %arg1[%c8, %c0_57, %c0_58] : memref<16x32x32xf32, #tpu.memory_space<vmem>>, vector<1x32x32xf32>
    %50 = vector.shape_cast %49 : vector<1x32x32xf32> to vector<32x32xf32>
    %cst_59 = arith.constant dense<0.000000e+00> : vector<1x32xf32>
    %51 = tpu.matmul %0, %50, %cst_59 {dimension_numbers = #tpu.dot_dimension_numbers<[1], [0], [0], [1], [0, 0, 1, 1], [], []>} : vector<1x32xf32>, vector<32x32xf32>, vector<1x32xf32> -> vector<1x32xf32>
    %c8_60 = arith.constant 8 : index
    %c0_61 = arith.constant 0 : index
    %52 = vector.load %arg2[%c8_60, %c0_61] : memref<16x32xf32, #tpu.memory_space<vmem>>, vector<1x32xf32>
    %53 = arith.addf %51, %52 : vector<1x32xf32>
    %c8_62 = arith.constant 8 : index
    %c0_63 = arith.constant 0 : index
    %54 = vector.load %arg6[%c8_62, %c0_63] : memref<16x32xf32, #tpu.memory_space<vmem>>, vector<1x32xf32>
    tpu.vector_store %arg6[%c8_62, %c0_63], %53 {strides = array<i32>} : memref<16x32xf32, #tpu.memory_space<vmem>>, vector<1x32xf32>,
    %c9 = arith.constant 9 : index
    %c0_64 = arith.constant 0 : index
    %c0_65 = arith.constant 0 : index
    %55 = vector.load %arg1[%c9, %c0_64, %c0_65] : memref<16x32x32xf32, #tpu.memory_space<vmem>>, vector<1x32x32xf32>
    %56 = vector.shape_cast %55 : vector<1x32x32xf32> to vector<32x32xf32>
    %cst_66 = arith.constant dense<0.000000e+00> : vector<1x32xf32>
    %57 = tpu.matmul %0, %56, %cst_66 {dimension_numbers = #tpu.dot_dimension_numbers<[1], [0], [0], [1], [0, 0, 1, 1], [], []>} : vector<1x32xf32>, vector<32x32xf32>, vector<1x32xf32> -> vector<1x32xf32>
    %c9_67 = arith.constant 9 : index
    %c0_68 = arith.constant 0 : index
    %58 = vector.load %arg2[%c9_67, %c0_68] : memref<16x32xf32, #tpu.memory_space<vmem>>, vector<1x32xf32>
    %59 = arith.addf %57, %58 : vector<1x32xf32>
    %c9_69 = arith.constant 9 : index
    %c0_70 = arith.constant 0 : index
    %60 = vector.load %arg6[%c9_69, %c0_70] : memref<16x32xf32, #tpu.memory_space<vmem>>, vector<1x32xf32>
    tpu.vector_store %arg6[%c9_69, %c0_70], %59 {strides = array<i32>} : memref<16x32xf32, #tpu.memory_space<vmem>>, vector<1x32xf32>,
    %c10 = arith.constant 10 : index
    %c0_71 = arith.constant 0 : index
    %c0_72 = arith.constant 0 : index
    %61 = vector.load %arg1[%c10, %c0_71, %c0_72] : memref<16x32x32xf32, #tpu.memory_space<vmem>>, vector<1x32x32xf32>
    %62 = vector.shape_cast %61 : vector<1x32x32xf32> to vector<32x32xf32>
    %cst_73 = arith.constant dense<0.000000e+00> : vector<1x32xf32>
    %63 = tpu.matmul %0, %62, %cst_73 {dimension_numbers = #tpu.dot_dimension_numbers<[1], [0], [0], [1], [0, 0, 1, 1], [], []>} : vector<1x32xf32>, vector<32x32xf32>, vector<1x32xf32> -> vector<1x32xf32>
    %c10_74 = arith.constant 10 : index
    %c0_75 = arith.constant 0 : index
    %64 = vector.load %arg2[%c10_74, %c0_75] : memref<16x32xf32, #tpu.memory_space<vmem>>, vector<1x32xf32>
    %65 = arith.addf %63, %64 : vector<1x32xf32>
    %c10_76 = arith.constant 10 : index
    %c0_77 = arith.constant 0 : index
    %66 = vector.load %arg6[%c10_76, %c0_77] : memref<16x32xf32, #tpu.memory_space<vmem>>, vector<1x32xf32>
    tpu.vector_store %arg6[%c10_76, %c0_77], %65 {strides = array<i32>} : memref<16x32xf32, #tpu.memory_space<vmem>>, vector<1x32xf32>,
    %c11 = arith.constant 11 : index
    %c0_78 = arith.constant 0 : index
    %c0_79 = arith.constant 0 : index
    %67 = vector.load %arg1[%c11, %c0_78, %c0_79] : memref<16x32x32xf32, #tpu.memory_space<vmem>>, vector<1x32x32xf32>
    %68 = vector.shape_cast %67 : vector<1x32x32xf32> to vector<32x32xf32>
    %cst_80 = arith.constant dense<0.000000e+00> : vector<1x32xf32>
    %69 = tpu.matmul %0, %68, %cst_80 {dimension_numbers = #tpu.dot_dimension_numbers<[1], [0], [0], [1], [0, 0, 1, 1], [], []>} : vector<1x32xf32>, vector<32x32xf32>, vector<1x32xf32> -> vector<1x32xf32>
    %c11_81 = arith.constant 11 : index
    %c0_82 = arith.constant 0 : index
    %70 = vector.load %arg2[%c11_81, %c0_82] : memref<16x32xf32, #tpu.memory_space<vmem>>, vector<1x32xf32>
    %71 = arith.addf %69, %70 : vector<1x32xf32>
    %c11_83 = arith.constant 11 : index
    %c0_84 = arith.constant 0 : index
    %72 = vector.load %arg6[%c11_83, %c0_84] : memref<16x32xf32, #tpu.memory_space<vmem>>, vector<1x32xf32>
    tpu.vector_store %arg6[%c11_83, %c0_84], %71 {strides = array<i32>} : memref<16x32xf32, #tpu.memory_space<vmem>>, vector<1x32xf32>,
    %c12 = arith.constant 12 : index
    %c0_85 = arith.constant 0 : index
    %c0_86 = arith.constant 0 : index
    %73 = vector.load %arg1[%c12, %c0_85, %c0_86] : memref<16x32x32xf32, #tpu.memory_space<vmem>>, vector<1x32x32xf32>
    %74 = vector.shape_cast %73 : vector<1x32x32xf32> to vector<32x32xf32>
    %cst_87 = arith.constant dense<0.000000e+00> : vector<1x32xf32>
    %75 = tpu.matmul %0, %74, %cst_87 {dimension_numbers = #tpu.dot_dimension_numbers<[1], [0], [0], [1], [0, 0, 1, 1], [], []>} : vector<1x32xf32>, vector<32x32xf32>, vector<1x32xf32> -> vector<1x32xf32>
    %c12_88 = arith.constant 12 : index
    %c0_89 = arith.constant 0 : index
    %76 = vector.load %arg2[%c12_88, %c0_89] : memref<16x32xf32, #tpu.memory_space<vmem>>, vector<1x32xf32>
    %77 = arith.addf %75, %76 : vector<1x32xf32>
    %c12_90 = arith.constant 12 : index
    %c0_91 = arith.constant 0 : index
    %78 = vector.load %arg6[%c12_90, %c0_91] : memref<16x32xf32, #tpu.memory_space<vmem>>, vector<1x32xf32>
    tpu.vector_store %arg6[%c12_90, %c0_91], %77 {strides = array<i32>} : memref<16x32xf32, #tpu.memory_space<vmem>>, vector<1x32xf32>,
    %c13 = arith.constant 13 : index
    %c0_92 = arith.constant 0 : index
    %c0_93 = arith.constant 0 : index
    %79 = vector.load %arg1[%c13, %c0_92, %c0_93] : memref<16x32x32xf32, #tpu.memory_space<vmem>>, vector<1x32x32xf32>
    %80 = vector.shape_cast %79 : vector<1x32x32xf32> to vector<32x32xf32>
    %cst_94 = arith.constant dense<0.000000e+00> : vector<1x32xf32>
    %81 = tpu.matmul %0, %80, %cst_94 {dimension_numbers = #tpu.dot_dimension_numbers<[1], [0], [0], [1], [0, 0, 1, 1], [], []>} : vector<1x32xf32>, vector<32x32xf32>, vector<1x32xf32> -> vector<1x32xf32>
    %c13_95 = arith.constant 13 : index
    %c0_96 = arith.constant 0 : index
    %82 = vector.load %arg2[%c13_95, %c0_96] : memref<16x32xf32, #tpu.memory_space<vmem>>, vector<1x32xf32>
    %83 = arith.addf %81, %82 : vector<1x32xf32>
    %c13_97 = arith.constant 13 : index
    %c0_98 = arith.constant 0 : index
    %84 = vector.load %arg6[%c13_97, %c0_98] : memref<16x32xf32, #tpu.memory_space<vmem>>, vector<1x32xf32>
    tpu.vector_store %arg6[%c13_97, %c0_98], %83 {strides = array<i32>} : memref<16x32xf32, #tpu.memory_space<vmem>>, vector<1x32xf32>,
    %c14 = arith.constant 14 : index
    %c0_99 = arith.constant 0 : index
    %c0_100 = arith.constant 0 : index
    %85 = vector.load %arg1[%c14, %c0_99, %c0_100] : memref<16x32x32xf32, #tpu.memory_space<vmem>>, vector<1x32x32xf32>
    %86 = vector.shape_cast %85 : vector<1x32x32xf32> to vector<32x32xf32>
    %cst_101 = arith.constant dense<0.000000e+00> : vector<1x32xf32>
    %87 = tpu.matmul %0, %86, %cst_101 {dimension_numbers = #tpu.dot_dimension_numbers<[1], [0], [0], [1], [0, 0, 1, 1], [], []>} : vector<1x32xf32>, vector<32x32xf32>, vector<1x32xf32> -> vector<1x32xf32>
    %c14_102 = arith.constant 14 : index
    %c0_103 = arith.constant 0 : index
    %88 = vector.load %arg2[%c14_102, %c0_103] : memref<16x32xf32, #tpu.memory_space<vmem>>, vector<1x32xf32>
    %89 = arith.addf %87, %88 : vector<1x32xf32>
    %c14_104 = arith.constant 14 : index
    %c0_105 = arith.constant 0 : index
    %90 = vector.load %arg6[%c14_104, %c0_105] : memref<16x32xf32, #tpu.memory_space<vmem>>, vector<1x32xf32>
    tpu.vector_store %arg6[%c14_104, %c0_105], %89 {strides = array<i32>} : memref<16x32xf32, #tpu.memory_space<vmem>>, vector<1x32xf32>,
    %c15 = arith.constant 15 : index
    %c0_106 = arith.constant 0 : index
    %c0_107 = arith.constant 0 : index
    %91 = vector.load %arg1[%c15, %c0_106, %c0_107] : memref<16x32x32xf32, #tpu.memory_space<vmem>>, vector<1x32x32xf32>
    %92 = vector.shape_cast %91 : vector<1x32x32xf32> to vector<32x32xf32>
    %cst_108 = arith.constant dense<0.000000e+00> : vector<1x32xf32>
    %93 = tpu.matmul %0, %92, %cst_108 {dimension_numbers = #tpu.dot_dimension_numbers<[1], [0], [0], [1], [0, 0, 1, 1], [], []>} : vector<1x32xf32>, vector<32x32xf32>, vector<1x32xf32> -> vector<1x32xf32>
    %c15_109 = arith.constant 15 : index
    %c0_110 = arith.constant 0 : index
    %94 = vector.load %arg2[%c15_109, %c0_110] : memref<16x32xf32, #tpu.memory_space<vmem>>, vector<1x32xf32>
    %95 = arith.addf %93, %94 : vector<1x32xf32>
    %c15_111 = arith.constant 15 : index
    %c0_112 = arith.constant 0 : index
    %96 = vector.load %arg6[%c15_111, %c0_112] : memref<16x32xf32, #tpu.memory_space<vmem>>, vector<1x32xf32>
    tpu.vector_store %arg6[%c15_111, %c0_112], %95 {strides = array<i32>} : memref<16x32xf32, #tpu.memory_space<vmem>>, vector<1x32xf32>,
    %c0_113 = arith.constant 0 : index
    %c0_114 = arith.constant 0 : index
    %97 = vector.load %arg3[%c0_113, %c0_114] : memref<8x16xf32, #tpu.memory_space<vmem>>, vector<8x16xf32>
    %c0_115 = arith.constant 0 : index
    %c0_116 = arith.constant 0 : index
    %98 = vector.load %arg6[%c0_115, %c0_116] : memref<16x32xf32, #tpu.memory_space<vmem>>, vector<16x32xf32>
    %cst_117 = arith.constant dense<0.000000e+00> : vector<8x32xf32>
    %99 = tpu.matmul %97, %98, %cst_117 {dimension_numbers = #tpu.dot_dimension_numbers<[1], [0], [0], [1], [0, 0, 1, 1], [], []>} : vector<8x16xf32>, vector<16x32xf32>, vector<8x32xf32> -> vector<8x32xf32>
    %c0_118 = arith.constant 0 : index
    %c0_119 = arith.constant 0 : index
    %100 = vector.load %arg4[%c0_118, %c0_119] : memref<1x32xf32, #tpu.memory_space<vmem>>, vector<1x32xf32>
    %101 = vector.broadcast %100 : vector<1x32xf32> to vector<8x32xf32>
    %102 = arith.addf %99, %101 : vector<8x32xf32>
    %c0_120 = arith.constant 0 : index
    %c0_121 = arith.constant 0 : index
    %103 = vector.load %arg5[%c0_120, %c0_121] : memref<8x32xf32, #tpu.memory_space<vmem>>, vector<8x32xf32>
    tpu.vector_store %arg5[%c0_120, %c0_121], %102 {strides = array<i32>} : memref<8x32xf32, #tpu.memory_space<vmem>>, vector<8x32xf32>,
    return
  }
}

</mosaic_0001>

<bundles_post_ra>
// kernel: continuous_wave_bridge_forward_batched.1
= control target key start
LH: loop header
LB: loop body
LE: loop exit
PB: predicated region body
PF: predicated region fallthrough
CT: control target
= control target key end

     0   :  { %10 = vsyncpa [#allocation4], 0  ;;  %s2046_s0 = inlined_call_operand.vmem [shape: f32[1,32], index: 0, kind: input, shape index: {}]   ;;  %s2047_s1 = inlined_call_operand.hbm [shape: f32[16,32,32], index: 1, kind: input, shape index: {}]   ;;  %s2048_s2 = inlined_call_operand.vmem [shape: f32[16,32], index: 2, kind: input, shape index: {}]   ;;  %s2049_s3 = inlined_call_operand.vmem [shape: f32[8,16], index: 3, kind: input, shape index: {}]   ;;  %s2050_s4 = inlined_call_operand.vmem [shape: f32[1,32], index: 4, kind: input, shape index: {}]   ;;  %s2051_s5 = inlined_call_operand.hbm [shape: f32[8,32], index: 5, kind: output, shape index: {}]  }
   0x1   :  { %11 = vsyncpa [#allocation5], 0  ;;  %s1810_s18 = smov [#allocation3]   ;;  %s1762_s22 = scalar_lea.hbm %s2047_s1, 8192 }
   0x2   :  { %s19_s19 = sshll.u32 %s1810_s18, 4  ;;  %p1763_p0 = scmp.ne.s32.totalorder %s2047_s1, %s1762_s22  ;;  %s20_s19 = int_to_ptr.vmem [resolvable:$true] %s19_s19 }
   0x3   :  { %p1766_p1 = scmp.lt.u32.totalorder %s1762_s22, %s2047_s1 }
   0x5   :  { %p1768_p2 = pnand %p1766_p1, %p1763_p0 }
   0x7   :  { %1771 = shalt.err (!%p1768_p2)
}
   0x8   :  { %s1772_s27 = scalar_lea.vmem %s20_s19, 8192  ;;  %p1777_p4 = scmp.lt.s32.totalorder %s20_s19, %s20_s19 }
   0x9   :  { %p1773_p3 = scmp.ne.s32.totalorder %s20_s19, %s1772_s27  ;;  %p1778_p5 = scmp.lt.s32.totalorder %s1772_s27, %s1772_s27 }
   0xb   :  { %p1779_p6 = por %p1778_p5, %p1777_p4 }
   0xd   :  { %p1780_p7 = pnand %p1779_p6, %p1773_p3 }
   0xf   :  { %1783 = shalt.err (!%p1780_p7)
}
  0x10   :  { %s1811_s28 = smov 128   ;;  %s1812_s29 = smov 8  }
  0x11   :  { %25 = dma.hbm_to_vmem [thread:$0]  %s2047_s1, 8192, %s20_s19, [#allocation4], %s1811_s28, %s1811_s28, %s1812_s29  }
  0x12   :  { %1806 = dma.done.wait [#allocation4], 8192  }
  0x13   :  { %1807 = vsyncadd [#allocation4], 4294959104  ;;  %v1813_v0 = vmov 0.0|0.0   ;;  %vm1814_vm0 = vmmov 0   ;;  %v1815_v1 = vmov 0.0   ;;  %v36_v2 = vld [vmem:[#allocation3] sm:$0xff] }
  0x14   :  { %1656 = vmatprep.subr.bf16.mxu0 %v1813_v0  ;;  %1662 = vmatprep.subr.bf16.mxu1 %v1813_v0  ;;  %v37_v3 = vld [vmem:[#allocation3 + $0x8] sm:$0xff]  ;;  %v118_v4 = vld [vmem:[#allocation3 + $0x20] sm:$0xff]  ;;  %v38_v7 = vld [vmem:[#allocation3 + $0x10] sm:$0xff]  ;;  %vm41_vm1 = vcmask 261120   ;;  %vm115_vm2 = vcmask 253952   ;;  %vm1282_vm3 = vcmask 130048  }
  0x15   :  { %1481 = vmatprep.mubr.msk.f32.mxu0 %vm1814_vm0, %v1815_v1  ;;  %1492 = vmatprep.mubr.msk.f32.mxu1 %vm1814_vm0, %v1815_v1  ;;  %v1657_v5 = vpack.c.bf16 %v37_v3, %v36_v2  ;;  %v119_v6 = vld [vmem:[#allocation3 + $0x28] sm:$0xff]  ;;  %v39_v8 = vld [vmem:[#allocation3 + $0x18] sm:$0xff]  ;;  %v120_v10 = vld [vmem:[#allocation3 + $0x30] sm:$0xff]  ;;  %s1816_s15 = smov [#allocation6]  }
  0x16   :  { %v1663_v9 = vpack.c.bf16 %v119_v6, %v118_v4  ;;  %v121_v11 = vld [vmem:[#allocation3 + $0x38] sm:$0xff]  ;;  %v1660_v12 = vpack.c.bf16 %v39_v8, %v38_v7  ;;  %v195_v14 = vld [vmem:[#allocation3 + $0x40] sm:$0xff]  ;;  %v196_v15 = vld [vmem:[#allocation3 + $0x48] sm:$0xff]  ;;  %s1363_s16 = sshll.u32 %s1816_s15, 4  ;;  %s1364_s16 = int_to_ptr.vmem [resolvable:$true] %s1363_s16 }
  0x17   :  { %1658 = vmatpush3.bf16.msra.mxu0 %v1657_v5  ;;  %v1666_v13 = vpack.c.bf16 %v121_v11, %v120_v10  ;;  %v272_v16 = vld [vmem:[#allocation3 + $0x60] sm:$0xff]  ;;  %v273_v17 = vld [vmem:[#allocation3 + $0x68] sm:$0xff]  ;;  %v1870_v18 = vld [vmem:[%s2046_s0] sm:$0x1]  ;;  %v1669_v19 = vpack.c.bf16 %v196_v15, %v195_v14  ;;  %s1784_s17 = scalar_lea.vmem %s1364_s16, 128  ;;  %p1789_p9 = scmp.lt.s32.totalorder %s1364_s16, %s1364_s16 }
  0x18   :  { %1664 = vmatpush3.bf16.msra.mxu1 %v1663_v9  ;;  %1659 = vmatprep.subr.bf16.mxu0 %v1813_v0  ;;  %v1675_v20 = vpack.c.bf16 %v273_v17, %v272_v16  ;;  %v197_v21 = vld [vmem:[#allocation3 + $0x50] sm:$0xff]  ;;  %v198_v22 = vld [vmem:[#allocation3 + $0x58] sm:$0xff]  ;;  %v349_v27 = vld [vmem:[#allocation3 + $0x80] sm:$0xff]  ;;  %p1785_p8 = scmp.ne.s32.totalorder %s1364_s16, %s1784_s17  ;;  %p1790_p10 = scmp.lt.s32.totalorder %s1784_s17, %s1784_s17 }
  0x19   :  { %1665 = vmatprep.subr.bf16.mxu1 %v1813_v0  ;;  %v274_v23 = vld [vmem:[#allocation3 + $0x70] sm:$0xff]  ;;  %v275_v24 = vld [vmem:[#allocation3 + $0x78] sm:$0xff]  ;;  %v1672_v25 = vpack.c.bf16 %v198_v22, %v197_v21  ;;  %v350_v28 = vld [vmem:[#allocation3 + $0x88] sm:$0xff] }
  0x1a   :  { %v1678_v26 = vpack.c.bf16 %v275_v24, %v274_v23  ;;  %v426_v29 = vld [vmem:[#allocation3 + $0xa0] sm:$0xff]  ;;  %v427_v30 = vld [vmem:[#allocation3 + $0xa8] sm:$0xff]  ;;  %v1681_v31 = vpack.c.bf16 %v350_v28, %v349_v27  ;;  %v351_v33 = vld [vmem:[#allocation3 + $0x90] sm:$0xff]  ;;  %p1791_p11 = por %p1790_p10, %p1789_p9 }
  0x1b   :  { %1661 = vmatpush3.bf16.msra.mxu0 %v1660_v12  ;;  %v1687_v32 = vpack.c.bf16 %v427_v30, %v426_v29  ;;  %v352_v34 = vld [vmem:[#allocation3 + $0x98] sm:$0xff]  ;;  %v428_v35 = vld [vmem:[#allocation3 + $0xb0] sm:$0xff]  ;;  %v503_v39 = vld [vmem:[#allocation3 + $0xc0] sm:$0xff] }
  0x1c   :  { %1667 = vmatpush3.bf16.msra.mxu1 %v1666_v13  ;;  %1668 = vmatprep.subr.bf16.mxu0 %v1813_v0  ;;  %v429_v36 = vld [vmem:[#allocation3 + $0xb8] sm:$0xff]  ;;  %v1684_v37 = vpack.c.bf16 %v352_v34, %v351_v33  ;;  %v504_v40 = vld [vmem:[#allocation3 + $0xc8] sm:$0xff]  ;;  %v580_v41 = vld [vmem:[#allocation3 + $0xe0] sm:$0xff]  ;;  %p1792_p12 = pnand %p1791_p11, %p1785_p8 }
  0x1d   :  { %1674 = vmatprep.subr.bf16.mxu1 %v1813_v0  ;;  %v1690_v38 = vpack.c.bf16 %v429_v36, %v428_v35  ;;  %v581_v42 = vld [vmem:[#allocation3 + $0xe8] sm:$0xff]  ;;  %v1693_v43 = vpack.c.bf16 %v504_v40, %v503_v39  ;;  %v505_v45 = vld [vmem:[#allocation3 + $0xd0] sm:$0xff]  ;;  %v506_v46 = vld [vmem:[#allocation3 + $0xd8] sm:$0xff] }
  0x1e   :  { %1482 = vmatmul.mubr.msk.f32.vlgmr.msra.gmra.mrb[0].mxu0 %vm41_vm1, %v1870_v18  ;;  %v1699_v44 = vpack.c.bf16 %v581_v42, %v580_v41  ;;  %v582_v47 = vld [vmem:[#allocation3 + $0xf0] sm:$0xff]  ;;  %v583_v48 = vld [vmem:[#allocation3 + $0xf8] sm:$0xff]  ;;  %v1696_v49 = vpack.c.bf16 %v506_v46, %v505_v45  ;;  %v657_v51 = vld [vmem:[#allocation3 + $0x100] sm:$0xff] }
  0x1f   :  { %1493 = vmatmul.mubr.msk.f32.vlgmr.msra.gmra.mrb[0].mxu1 %vm41_vm1, %v1870_v18  ;;  %1670 = vmatpush3.bf16.msra.mxu0 %v1669_v19  ;;  %v1702_v50 = vpack.c.bf16 %v583_v48, %v582_v47  ;;  %v658_v52 = vld [vmem:[#allocation3 + $0x108] sm:$0xff]  ;;  %v734_v53 = vld [vmem:[#allocation3 + $0x120] sm:$0xff]  ;;  %v659_v57 = vld [vmem:[#allocation3 + $0x110] sm:$0xff] }
  0x20   :  { %1676 = vmatpush3.bf16.msra.mxu1 %v1675_v20  ;;  %1671 = vmatprep.subr.bf16.mxu0 %v1813_v0  ;;  %v735_v54 = vld [vmem:[#allocation3 + $0x128] sm:$0xff]  ;;  %v1705_v55 = vpack.c.bf16 %v658_v52, %v657_v51  ;;  %v660_v58 = vld [vmem:[#allocation3 + $0x118] sm:$0xff]  ;;  %v736_v59 = vld [vmem:[#allocation3 + $0x130] sm:$0xff] }
  0x21   :  { %1677 = vmatprep.subr.bf16.mxu1 %v1813_v0  ;;  %1503 = vmatprep.mubr.msk.f32.mxu0 %vm1814_vm0, %v1815_v1  ;;  %v1711_v56 = vpack.c.bf16 %v735_v54, %v734_v53  ;;  %v737_v60 = vld [vmem:[#allocation3 + $0x138] sm:$0xff]  ;;  %v1708_v61 = vpack.c.bf16 %v660_v58, %v659_v57  ;;  %v811_v63 = vld [vmem:[#allocation3 + $0x140] sm:$0xff]  ;;  %v812_v2 = vld [vmem:[#allocation3 + $0x148] sm:$0xff] }
  0x22   :  { %1514 = vmatprep.mubr.msk.f32.mxu1 %vm1814_vm0, %v1815_v1  ;;  %v1714_v62 = vpack.c.bf16 %v737_v60, %v736_v59  ;;  %v888_v3 = vld [vmem:[#allocation3 + $0x160] sm:$0xff]  ;;  %v889_v4 = vld [vmem:[#allocation3 + $0x168] sm:$0xff]  ;;  %v1717_v5 = vpack.c.bf16 %v812_v2, %v811_v63  ;;  %v813_v7 = vld [vmem:[#allocation3 + $0x150] sm:$0xff] }
  0x23   :  { %1673 = vmatpush3.bf16.msra.mxu0 %v1672_v25  ;;  %v1723_v6 = vpack.c.bf16 %v889_v4, %v888_v3  ;;  %v814_v8 = vld [vmem:[#allocation3 + $0x158] sm:$0xff]  ;;  %v890_v9 = vld [vmem:[#allocation3 + $0x170] sm:$0xff]  ;;  %v965_v13 = vld [vmem:[#allocation3 + $0x180] sm:$0xff] }
  0x24   :  { %1679 = vmatpush3.bf16.msra.mxu1 %v1678_v26  ;;  %1680 = vmatprep.subr.bf16.mxu0 %v1813_v0  ;;  %v891_v10 = vld [vmem:[#allocation3 + $0x178] sm:$0xff]  ;;  %v1720_v11 = vpack.c.bf16 %v814_v8, %v813_v7  ;;  %v966_v14 = vld [vmem:[#allocation3 + $0x188] sm:$0xff]  ;;  %v1042_v15 = vld [vmem:[#allocation3 + $0x1a0] sm:$0xff] }
  0x25   :  { %1686 = vmatprep.subr.bf16.mxu1 %v1813_v0  ;;  %v1726_v12 = vpack.c.bf16 %v891_v10, %v890_v9  ;;  %v1043_v16 = vld [vmem:[#allocation3 + $0x1a8] sm:$0xff]  ;;  %v1729_v17 = vpack.c.bf16 %v966_v14, %v965_v13  ;;  %v967_v20 = vld [vmem:[#allocation3 + $0x190] sm:$0xff]  ;;  %v968_v21 = vld [vmem:[#allocation3 + $0x198] sm:$0xff] }
  0x26   :  { %1504 = vmatmul.mubr.msk.f32.vlgmr.msra.gmra.mrb[2].mxu0 %vm41_vm1, %v1870_v18  ;;  %v1735_v19 = vpack.c.bf16 %v1043_v16, %v1042_v15  ;;  %v1044_v22 = vld [vmem:[#allocation3 + $0x1b0] sm:$0xff]  ;;  %v1045_v23 = vld [vmem:[#allocation3 + $0x1b8] sm:$0xff]  ;;  %v1732_v24 = vpack.c.bf16 %v968_v21, %v967_v20  ;;  %v1119_v26 = vld [vmem:[#allocation3 + $0x1c0] sm:$0xff] }
  0x27   :  { %1515 = vmatmul.mubr.msk.f32.vlgmr.msra.gmra.mrb[2].mxu1 %vm41_vm1, %v1870_v18  ;;  %1682 = vmatpush3.bf16.msra.mxu0 %v1681_v31  ;;  %v1738_v25 = vpack.c.bf16 %v1045_v23, %v1044_v22  ;;  %v1120_v27 = vld [vmem:[#allocation3 + $0x1c8] sm:$0xff]  ;;  %v1196_v28 = vld [vmem:[#allocation3 + $0x1e0] sm:$0xff]  ;;  %v1122_v33 = vld [vmem:[#allocation3 + $0x1d8] sm:$0xff] }
  0x28   :  { %1688 = vmatpush3.bf16.msra.mxu1 %v1687_v32  ;;  %1683 = vmatprep.subr.bf16.mxu0 %v1813_v0  ;;  %v1197_v29 = vld [vmem:[#allocation3 + $0x1e8] sm:$0xff]  ;;  %v1741_v30 = vpack.c.bf16 %v1120_v27, %v1119_v26  ;;  %v1121_v32 = vld [vmem:[#allocation3 + $0x1d0] sm:$0xff]  ;;  %v1199_v35 = vld [vmem:[#allocation3 + $0x1f8] sm:$0xff] }
  0x29   :  { %1689 = vmatprep.subr.bf16.mxu1 %v1813_v0  ;;  %1525 = vmatprep.mubr.msk.f32.mxu0 %vm1814_vm0, %v1815_v1  ;;  %v1747_v31 = vpack.c.bf16 %v1197_v29, %v1196_v28  ;;  %v1198_v34 = vld [vmem:[#allocation3 + $0x1f0] sm:$0xff]  ;;  %v1744_v36 = vpack.c.bf16 %v1122_v33, %v1121_v32  ;;  %v815_v13 = vld [vmem:[%s2048_s2 + $0xa] sm:$0x1]  ;;  %v892_v14 = vld [vmem:[%s2048_s2 + $0xb] sm:$0x1] }
  0x2a   :  { %1536 = vmatprep.mubr.msk.f32.mxu1 %vm1814_vm0, %v1815_v1  ;;  %v122_v39 = vld [vmem:[%s2048_s2 + $0x1] sm:$0x1]  ;;  %v353_v51 = vld [vmem:[%s2048_s2 + $0x4] sm:$0x1]  ;;  %v430_v52 = vld [vmem:[%s2048_s2 + $0x5] sm:$0x1] }
  0x2b   :  { %1685 = vmatpush3.bf16.msra.mxu0 %v1684_v37  ;;  %v1750_v37 = vpack.c.bf16 %v1199_v35, %v1198_v34  ;;  %v507_v59 = vld [vmem:[%s2048_s2 + $0x6] sm:$0x1]  ;;  %v584_v60 = vld [vmem:[%s2048_s2 + $0x7] sm:$0x1]  ;;  %v969_v22 = vld [vmem:[%s2048_s2 + $0xc] sm:$0x1] }
  0x2c   :  { %1691 = vmatpush3.bf16.msra.mxu1 %v1690_v38  ;;  %1692 = vmatprep.subr.bf16.mxu0 %v1813_v0  ;;  %v40_v38 = vld [vmem:[%s2048_s2] sm:$0x1]  ;;  %v1046_v23 = vld [vmem:[%s2048_s2 + $0xd] sm:$0x1] }
  0x2d   :  { %1698 = vmatprep.subr.bf16.mxu1 %v1813_v0 }
  0x2e   :  { %1526 = vmatmul.mubr.msk.f32.vlgmr.msra.gmra.mrb[4].mxu0 %vm41_vm1, %v1870_v18 }
  0x2f   :  { %1537 = vmatmul.mubr.msk.f32.vlgmr.msra.gmra.mrb[4].mxu1 %vm41_vm1, %v1870_v18  ;;  %1694 = vmatpush3.bf16.msra.mxu0 %v1693_v43 }
  0x30   :  { %1700 = vmatpush3.bf16.msra.mxu1 %v1699_v44  ;;  %1695 = vmatprep.subr.bf16.mxu0 %v1813_v0 }
  0x31   :  { %1701 = vmatprep.subr.bf16.mxu1 %v1813_v0  ;;  %1547 = vmatprep.mubr.msk.f32.mxu0 %vm1814_vm0, %v1815_v1 }
  0x32   :  { %1558 = vmatprep.mubr.msk.f32.mxu1 %vm1814_vm0, %v1815_v1 }
  0x33   :  { %1697 = vmatpush3.bf16.msra.mxu0 %v1696_v49 }
  0x34   :  { %1703 = vmatpush3.bf16.msra.mxu1 %v1702_v50  ;;  %1704 = vmatprep.subr.bf16.mxu0 %v1813_v0 }
  0x35   :  { %1710 = vmatprep.subr.bf16.mxu1 %v1813_v0 }
  0x36   :  { %1548 = vmatmul.mubr.msk.f32.vlgmr.msra.gmra.mrb[6].mxu0 %vm41_vm1, %v1870_v18 }
  0x37   :  { %1559 = vmatmul.mubr.msk.f32.vlgmr.msra.gmra.mrb[6].mxu1 %vm41_vm1, %v1870_v18  ;;  %1706 = vmatpush3.bf16.msra.mxu0 %v1705_v55 }
  0x38   :  { %1712 = vmatpush3.bf16.msra.mxu1 %v1711_v56  ;;  %1707 = vmatprep.subr.bf16.mxu0 %v1813_v0 }
  0x39   :  { %1713 = vmatprep.subr.bf16.mxu1 %v1813_v0  ;;  %1569 = vmatprep.mubr.msk.f32.mxu0 %vm1814_vm0, %v1815_v1 }
  0x3a   :  { %1580 = vmatprep.mubr.msk.f32.mxu1 %vm1814_vm0, %v1815_v1 }
  0x3b   :  { %1709 = vmatpush3.bf16.msra.mxu0 %v1708_v61 }
  0x3c   :  { %1715 = vmatpush3.bf16.msra.mxu1 %v1714_v62  ;;  %1716 = vmatprep.subr.bf16.mxu0 %v1813_v0 }
  0x3d   :  { %1722 = vmatprep.subr.bf16.mxu1 %v1813_v0 }
  0x3e   :  { %1570 = vmatmul.mubr.msk.f32.vlgmr.msra.gmra.mrb[8].mxu0 %vm41_vm1, %v1870_v18 }
  0x3f   :  { %1581 = vmatmul.mubr.msk.f32.vlgmr.msra.gmra.mrb[8].mxu1 %vm41_vm1, %v1870_v18  ;;  %1718 = vmatpush3.bf16.msra.mxu0 %v1717_v5  ;;  %v661_v5 = vld [vmem:[%s2048_s2 + $0x8] sm:$0x1] }
  0x40   :  { %1724 = vmatpush3.bf16.msra.mxu1 %v1723_v6  ;;  %1719 = vmatprep.subr.bf16.mxu0 %v1813_v0  ;;  %v738_v6 = vld [vmem:[%s2048_s2 + $0x9] sm:$0x1] }
  0x41   :  { %1725 = vmatprep.subr.bf16.mxu1 %v1813_v0  ;;  %1591 = vmatprep.mubr.msk.f32.mxu0 %vm1814_vm0, %v1815_v1 }
  0x42   :  { %1602 = vmatprep.mubr.msk.f32.mxu1 %vm1814_vm0, %v1815_v1 }
  0x43   :  { %1721 = vmatpush3.bf16.msra.mxu0 %v1720_v11 }
  0x44   :  { %1727 = vmatpush3.bf16.msra.mxu1 %v1726_v12  ;;  %1728 = vmatprep.subr.bf16.mxu0 %v1813_v0 }
  0x45   :  { %1734 = vmatprep.subr.bf16.mxu1 %v1813_v0 }
  0x46   :  { %1592 = vmatmul.mubr.msk.f32.vlgmr.msra.gmra.mrb[10].mxu0 %vm41_vm1, %v1870_v18 }
  0x47   :  { %1603 = vmatmul.mubr.msk.f32.vlgmr.msra.gmra.mrb[10].mxu1 %vm41_vm1, %v1870_v18  ;;  %1730 = vmatpush3.bf16.msra.mxu0 %v1729_v17 }
  0x48   :  { %1736 = vmatpush3.bf16.msra.mxu1 %v1735_v19  ;;  %1731 = vmatprep.subr.bf16.mxu0 %v1813_v0 }
  0x49   :  { %1737 = vmatprep.subr.bf16.mxu1 %v1813_v0  ;;  %1613 = vmatprep.mubr.msk.f32.mxu0 %vm1814_vm0, %v1815_v1 }
  0x4a   :  { %1624 = vmatprep.mubr.msk.f32.mxu1 %vm1814_vm0, %v1815_v1 }
  0x4b   :  { %1733 = vmatpush3.bf16.msra.mxu0 %v1732_v24 }
  0x4c   :  { %1739 = vmatpush3.bf16.msra.mxu1 %v1738_v25  ;;  %1740 = vmatprep.subr.bf16.mxu0 %v1813_v0 }
  0x4d   :  { %1746 = vmatprep.subr.bf16.mxu1 %v1813_v0 }
  0x4e   :  { %1614 = vmatmul.mubr.msk.f32.vlgmr.msra.gmra.mrb[12].mxu0 %vm41_vm1, %v1870_v18 }
  0x4f   :  { %1625 = vmatmul.mubr.msk.f32.vlgmr.msra.gmra.mrb[12].mxu1 %vm41_vm1, %v1870_v18  ;;  %1742 = vmatpush3.bf16.msra.mxu0 %v1741_v30  ;;  %v1123_v30 = vld [vmem:[%s2048_s2 + $0xe] sm:$0x1] }
  0x50   :  { %1748 = vmatpush3.bf16.msra.mxu1 %v1747_v31  ;;  %1743 = vmatprep.subr.bf16.mxu0 %v1813_v0  ;;  %v1200_v31 = vld [vmem:[%s2048_s2 + $0xf] sm:$0x1] }
  0x51   :  { %1749 = vmatprep.subr.bf16.mxu1 %v1813_v0  ;;  %1635 = vmatprep.mubr.msk.f32.mxu0 %vm1814_vm0, %v1815_v1 }
  0x52   :  { %1646 = vmatprep.mubr.msk.f32.mxu1 %vm1814_vm0, %v1815_v1 }
  0x53   :  { %1745 = vmatpush3.bf16.msra.mxu0 %v1744_v36 }
  0x54   :  { %1751 = vmatpush3.bf16.msra.mxu1 %v1750_v37  ;;  %1752 = vmatprep.subr.bf16.mxu0 %v1813_v0 }
  0x56   :  { %1636 = vmatmul.mubr.msk.f32.vlgmr.msra.gmra.mrb[14].mxu0 %vm41_vm1, %v1870_v18 }
  0x57   :  { %1647 = vmatmul.mubr.msk.f32.vlgmr.msra.gmra.mrb[14].mxu1 %vm41_vm1, %v1870_v18  ;;  %1653 = vmatprep.mubr.msk.f32.mxu0 %vm1814_vm0, %v1815_v1  ;;  %v199_v1 = vld [vmem:[%s2048_s2 + $0x2] sm:$0x1]  ;;  %v276_v18 = vld [vmem:[%s2048_s2 + $0x3] sm:$0x1] }
  0xf1   :  { %v111_v40 = vpop.f32.mrb[0].mxu0 }
  0xf2   :  { %v112_v0 = vadd.f32 %v111_v40, %v40_v38  ;;  %v189_v41 = vpop.f32.mrb[0].mxu1  ;;  %v1483_v42 = vpop.f32.mrb[1].mxu0 }
  0xf3   :  { %v190_v43 = vadd.f32 %v189_v41, %v122_v39  ;;  %v1494_v44 = vpop.f32.mrb[1].mxu1  ;;  %v1388_v41 = vld [vmem:[%s2050_s4] ss:$0 sm:$0xff] }
  0xf4   :  { %116 = vst.msk [vmem:[#allocation2] sm:$0x1] %vm115_vm2, %v112_v0  ;;  %v1272_v0 = vld [vmem:[%s2049_s3] sm:$0xff] }
  0xf5   :  { %193 = vst.msk [vmem:[#allocation2 + $0x1] sm:$0x1] %vm115_vm2, %v190_v43 }
  0xf9   :  { %v266_v45 = vpop.f32.mrb[2].mxu0 }
  0xfa   :  { %v267_v46 = vadd.f32 %v266_v45, %v199_v1  ;;  %v343_v47 = vpop.f32.mrb[2].mxu1  ;;  %v1505_v48 = vpop.f32.mrb[3].mxu0 }
  0xfb   :  { %v344_v49 = vadd.f32 %v343_v47, %v276_v18  ;;  %v1516_v50 = vpop.f32.mrb[3].mxu1 }
  0xfc   :  { %270 = vst.msk [vmem:[#allocation2 + $0x2] sm:$0x1] %vm115_vm2, %v267_v46 }
  0xfd   :  { %347 = vst.msk [vmem:[#allocation2 + $0x3] sm:$0x1] %vm115_vm2, %v344_v49 }
 0x101   :  { %v420_v53 = vpop.f32.mrb[4].mxu0 }
 0x102   :  { %v421_v54 = vadd.f32 %v420_v53, %v353_v51  ;;  %v497_v55 = vpop.f32.mrb[4].mxu1  ;;  %v1527_v56 = vpop.f32.mrb[5].mxu0 }
 0x103   :  { %v498_v57 = vadd.f32 %v497_v55, %v430_v52  ;;  %v1538_v58 = vpop.f32.mrb[5].mxu1 }
 0x104   :  { %424 = vst.msk [vmem:[#allocation2 + $0x4] sm:$0x1] %vm115_vm2, %v421_v54 }
 0x105   :  { %501 = vst.msk [vmem:[#allocation2 + $0x5] sm:$0x1] %vm115_vm2, %v498_v57 }
 0x109   :  { %v574_v61 = vpop.f32.mrb[6].mxu0 }
 0x10a   :  { %v575_v62 = vadd.f32 %v574_v61, %v507_v59  ;;  %v651_v63 = vpop.f32.mrb[6].mxu1  ;;  %v1549_v2 = vpop.f32.mrb[7].mxu0 }
 0x10b   :  { %v652_v3 = vadd.f32 %v651_v63, %v584_v60  ;;  %v1560_v4 = vpop.f32.mrb[7].mxu1 }
 0x10c   :  { %578 = vst.msk [vmem:[#allocation2 + $0x6] sm:$0x1] %vm115_vm2, %v575_v62 }
 0x10d   :  { %655 = vst.msk [vmem:[#allocation2 + $0x7] sm:$0x1] %vm115_vm2, %v652_v3 }
 0x111   :  { %v728_v7 = vpop.f32.mrb[8].mxu0 }
 0x112   :  { %v729_v8 = vadd.f32 %v728_v7, %v661_v5  ;;  %v805_v9 = vpop.f32.mrb[8].mxu1  ;;  %v1571_v10 = vpop.f32.mrb[9].mxu0 }
 0x113   :  { %v806_v11 = vadd.f32 %v805_v9, %v738_v6  ;;  %v1582_v12 = vpop.f32.mrb[9].mxu1 }
 0x114   :  { %732 = vst.msk [vmem:[#allocation2 + $0x8] sm:$0x1] %vm115_vm2, %v729_v8  ;;  %v1273_v38 = vld [vmem:[#allocation2] sm:$0xff] }
 0x115   :  { %809 = vst.msk [vmem:[#allocation2 + $0x9] sm:$0x1] %vm115_vm2, %v806_v11 }
 0x119   :  { %v882_v15 = vpop.f32.mrb[10].mxu0 }
 0x11a   :  { %v883_v16 = vadd.f32 %v882_v15, %v815_v13  ;;  %v959_v17 = vpop.f32.mrb[10].mxu1  ;;  %v1593_v19 = vpop.f32.mrb[11].mxu0 }
 0x11b   :  { %v960_v20 = vadd.f32 %v959_v17, %v892_v14  ;;  %v1604_v21 = vpop.f32.mrb[11].mxu1 }
 0x11c   :  { %886 = vst.msk [vmem:[#allocation2 + $0xa] sm:$0x1] %vm115_vm2, %v883_v16 }
 0x11d   :  { %963 = vst.msk [vmem:[#allocation2 + $0xb] sm:$0x1] %vm115_vm2, %v960_v20 }
 0x121   :  { %v1036_v24 = vpop.f32.mrb[12].mxu0 }
 0x122   :  { %v1037_v25 = vadd.f32 %v1036_v24, %v969_v22  ;;  %v1113_v26 = vpop.f32.mrb[12].mxu1  ;;  %v1615_v27 = vpop.f32.mrb[13].mxu0 }
 0x123   :  { %v1114_v28 = vadd.f32 %v1113_v26, %v1046_v23  ;;  %v1626_v29 = vpop.f32.mrb[13].mxu1 }
 0x124   :  { %1040 = vst.msk [vmem:[#allocation2 + $0xc] sm:$0x1] %vm115_vm2, %v1037_v25 }
 0x125   :  { %1117 = vst.msk [vmem:[#allocation2 + $0xd] sm:$0x1] %vm115_vm2, %v1114_v28 }
 0x129   :  { %v1190_v32 = vpop.f32.mrb[14].mxu0 }
 0x12a   :  { %v1191_v33 = vadd.f32 %v1190_v32, %v1123_v30  ;;  %v1267_v34 = vpop.f32.mrb[14].mxu1  ;;  %v1637_v35 = vpop.f32.mrb[15].mxu0 }
 0x12b   :  { %v1268_v36 = vadd.f32 %v1267_v34, %v1200_v31  ;;  %v1648_v37 = vpop.f32.mrb[15].mxu1 }
 0x12c   :  { %1194 = vst.msk [vmem:[#allocation2 + $0xe] sm:$0x1] %vm115_vm2, %v1191_v33 }
 0x12d   :  { %1271 = vst.msk [vmem:[#allocation2 + $0xf] sm:$0x1] %vm115_vm2, %v1268_v36 }
 0x134   :  { %v1274_v39 = vld [vmem:[#allocation2 + $0x8] sm:$0xff] }
 0x135   :  { %v1753_v40 = vpack.c.bf16 %v1274_v39, %v1273_v38 }
 0x137   :  { %1754 = vmatpush3.bf16.msra.mxu0 %v1753_v40 }
 0x13a   :  { %1654 = vmatmul.mubr.msk.f32.vlgmr.msra.gmra.mrb[16].mxu0 %vm1282_vm3, %v1272_v0 }
 0x20d   :  { %v1352_v42 = vpop.f32.mrb[16].mxu0 }
 0x20e   :  { %v1353_v43 = vadd.f32 %v1388_v41, %v1352_v42  ;;  %v1655_v44 = vpop.f32.mrb[17].mxu0 }
 0x210   :  { %1356 = vst.msk [vmem:[#allocation6] sm:$0xff] %vm41_vm1, %v1353_v43 }
 0x211   :  { %1795 = shalt.err (!%p1792_p12)
}
 0x212   :  { %s1796_s19 = scalar_lea.hbm %s2051_s5, 128 }
 0x213   :  { %p1797_p13 = scmp.ne.s32.totalorder %s2051_s5, %s1796_s19  ;;  %p1800_p0 = scmp.lt.u32.totalorder %s1796_s19, %s2051_s5 }
 0x215   :  { %p1802_p1 = pnand %p1800_p0, %p1797_p13 }
 0x217   :  { %1805 = shalt.err (!%p1802_p1)
}
 0x218   :  { %1366 = dma.vmem_to_hbm [thread:$0]  %s1364_s16, 128, %s2051_s5, [#allocation5]  }
 0x219   :  { %1808 = dma.done.wait [#allocation5], 128  }
 0x21a   :  { %1809 = vsyncadd [#allocation5], 4294967168 }
 0x21b   :  { %1370 = vsyncpa [#allocation4], 1 }
 0x21c   :  { %1371 = vsyncpa [#allocation5], 1 }

</bundles_post_ra>
